<compile_context>
chip_gen: v7x
topology: tpu7x:2x2x1
jax: 0.10.0
libtpu: 0.0.40
codegen_flags: <defaults>
</compile_context>

<pallas_src>
import jax
import jax.numpy as jnp
from jax.experimental import pallas as pl
from jax.experimental.pallas import tpu as pltpu

N_STATE = 4       # CartPole-v1 observation size
HIDDEN = 128
N_ACTIONS = 2     # CartPole-v1 action space


def _policy_kernel(xT_ref, w1t_ref, b1c_ref, w2c_ref, b2_ref, o_ref):
    # Batch-on-lane layout:
    #   xT_ref:  (N_STATE, B)          f32-castable
    #   w1t_ref: (HIDDEN, N_STATE)     (128, 4)
    #   b1c_ref: (HIDDEN, 1)           (128, 1)
    #   w2c_ref: (HIDDEN, N_ACTIONS)   (128, 2)
    #   b2_ref:  (1, N_ACTIONS)        SMEM scalars
    #   o_ref:   (N_ACTIONS, B)        lane-dense output
    xT = xT_ref[...].astype(jnp.float32)      # (4, B)
    w1t = w1t_ref[...]                        # (128, 4)

    # ---- fc1 + relu, batch on lanes --------------------------------------
    # (128,1) weight-column lane-broadcasts are per-call constants; the x rows
    # (1,B) only sublane-broadcast.  4 vmul + 3 vadd per (8,128) output vreg.
    hT = w1t[:, 0:1] * xT[0:1, :]             # (128, B)
    for k in range(1, N_STATE):
        hT = hT + w1t[:, k:k + 1] * xT[k:k + 1, :]
    hT = jnp.maximum(hT + b1c_ref[...], 0.0)  # (128, B), f32 VPU

    w2c = w2c_ref[...]                        # (128, 2)

    # ---- fc2 + softmax(dim=0 of the original == lane axis here) ----------
    # Columns are independent under a dim=0 softmax, so keep them separate.
    for a in range(N_ACTIONS):
        w2a = w2c[:, a:a + 1]                                  # (128, 1) constant
        # hidden contraction = sublane reduce: 15 vadds + 1 small xlane-free
        # sublane reduction per 128-lane group; no MXU.
        logit = jnp.sum(w2a * hT, axis=0, keepdims=True)       # (1, B)
        logit = logit + b2_ref[0, a]                           # scalar add (SMEM)

        m = jnp.max(logit, axis=-1, keepdims=True)             # (1, 1) XLU
        p = jnp.exp(logit - m)                                 # (1, B) EUP
        s = jnp.sum(p, axis=-1, keepdims=True)                 # (1, 1) XLU
        inv = 1.0 / s                                          # exact (scalar-sized)
        o_ref[pl.ds(a, 1), :] = p * inv                        # lane-dense store


def policy_net_forward(x, w1, b1, w2t, b2):
    """x: (B, N_STATE) -> (B, 1, N_ACTIONS), matching PolicyNet.forward.

    Batch many environment states per call: at B <~ 512 the cost is entirely
    kernel launch + ~3 KB of weight DMA, not anything inside the body.

    Parameter layouts (external API, torch-native):
      w1  (N_STATE, HIDDEN), b1 (HIDDEN,), w2t (N_ACTIONS, HIDDEN), b2 (N_ACTIONS,)
    The wrapper transposes to the batch-on-lane kernel layout (layout plumbing).
    """
    B = x.shape[0]

    xT = jnp.transpose(x)                       # (N_STATE, B)
    w1t = jnp.transpose(w1)                     # (HIDDEN, N_STATE)
    b1c = b1.reshape(HIDDEN, 1)                 # (HIDDEN, 1)
    w2c = jnp.transpose(w2t)                    # (HIDDEN, N_ACTIONS)
    b2s = b2.reshape(1, N_ACTIONS)              # (1, N_ACTIONS) -> SMEM

    vmem = pl.BlockSpec(memory_space=pltpu.MemorySpace.VMEM)
    smem = pl.BlockSpec(memory_space=pltpu.MemorySpace.SMEM)

    # Rough single-block VMEM footprint (f32): hT + temps dominate at large B.
    est_bytes = 4 * ((2 * HIDDEN + N_STATE + N_ACTIONS) * B) + (64 << 10)

    compiler_params = None
    if est_bytes > (12 << 20):   # below every generation's scoped default
        try:
            phys = pltpu.get_tpu_info().vmem_capacity_bytes
        except Exception:
            phys = 64 << 20      # v7x physical minimum across generations
        cap = (phys * 3) // 4    # leave headroom for compiler internal scratch
        compiler_params = pltpu.CompilerParams(
            vmem_limit_bytes=int(min(2 * est_bytes, cap)))
        # TODO(synk): if 2*est_bytes exceeds `cap`, switch to the tiled
        # two-pass dim=0 softmax described at the top of this file.

    oT = pl.pallas_call(
        _policy_kernel,
        out_shape=jax.ShapeDtypeStruct((N_ACTIONS, B), jnp.float32),
        in_specs=[vmem, vmem, vmem, vmem, smem],
        out_specs=vmem,
        compiler_params=compiler_params,
    )(xT, w1t, b1c, w2c, b2s)

    # Transpose back + unsqueeze(1): pure glue outside the kernel.
    return jnp.transpose(oT).reshape(B, 1, N_ACTIONS)


def init_params(key):
    """nn.Linear-style U(-1/sqrt(fan_in), 1/sqrt(fan_in)) init.

    w1 stored (in, out) = (N_STATE, HIDDEN); w2 stored in torch's native
    (out, in) = (N_ACTIONS, HIDDEN) layout.
    """
    k1, k2, k3, k4 = jax.random.split(key, 4)
    bound1 = 1.0 / jnp.sqrt(N_STATE)
    bound2 = 1.0 / jnp.sqrt(HIDDEN)
    w1 = jax.random.uniform(k1, (N_STATE, HIDDEN), jnp.float32, -bound1, bound1)
    b1 = jax.random.uniform(k2, (HIDDEN,), jnp.float32, -bound1, bound1)
    w2t = jax.random.uniform(k3, (N_ACTIONS, HIDDEN), jnp.float32, -bound2, bound2)
    b2 = jax.random.uniform(k4, (N_ACTIONS,), jnp.float32, -bound2, bound2)
    return w1, b1, w2t, b2


def policy_net_ref(x, w1, b1, w2t, b2):
    """Pure-JAX reference of the same forward pass."""
    h = jnp.maximum(x @ w1 + b1, 0.0)
    logits = (h @ w2t.T + b2)[:, None, :]       # unsqueeze(1)
    return jax.nn.softmax(logits, axis=0)       # softmax over dim=0 (batch)


if __name__ == "__main__":
    key = jax.random.PRNGKey(0)
    pkey, xkey = jax.random.split(key)
    w1, b1, w2t, b2 = init_params(pkey)

    B = 8  # small batch of CartPole states
    x = jax.random.normal(xkey, (B, N_STATE), dtype=jnp.float32)

    out = policy_net_forward(x, w1, b1, w2t, b2)
    out = jax.block_until_ready(out)

    ref = policy_net_ref(x, w1, b1, w2t, b2)
    assert out.shape == (B, 1, N_ACTIONS)
    # exact division in the softmax => tight tolerance
    assert jnp.allclose(out, ref, atol=1e-5, rtol=1e-5), float(jnp.max(jnp.abs(out - ref)))
    # columns of a dim=0 softmax sum to ~1 across the batch
    assert jnp.allclose(jnp.sum(out, axis=0), jnp.ones((1, N_ACTIONS)), atol=1e-5)

    print("KERNEL_OK")
</pallas_src>

<mosaic_0001>
module attributes {stable_mosaic.version = 11 : i64} {
  func.func @_policy_kernel(%arg0: memref<4x8xf32, #tpu.memory_space<vmem>>, %arg1: memref<128x4xf32, #tpu.memory_space<vmem>>, %arg2: memref<128x1xf32, #tpu.memory_space<vmem>>, %arg3: memref<128x2xf32, #tpu.memory_space<vmem>>, %arg4: memref<1x2xf32, #tpu.memory_space<smem>>, %arg5: memref<2x8xf32, #tpu.memory_space<vmem>>) attributes {dimension_semantics = [], scalar_prefetch = 0 : i64, scratch_operands = 0 : i64, tpu.core_type = #tpu.core_type<tc>} {
    %c0 = arith.constant 0 : index
    %c0_0 = arith.constant 0 : index
    %0 = vector.load %arg0[%c0, %c0_0] : memref<4x8xf32, #tpu.memory_space<vmem>>, vector<4x8xf32>
    %c0_1 = arith.constant 0 : index
    %c0_2 = arith.constant 0 : index
    %1 = vector.load %arg1[%c0_1, %c0_2] : memref<128x4xf32, #tpu.memory_space<vmem>>, vector<128x4xf32>
    %2 = vector.extract_strided_slice %1 {offsets = [0, 0], sizes = [128, 1], strides = [1, 1]} : vector<128x4xf32> to vector<128x1xf32>
    %3 = vector.extract_strided_slice %0 {offsets = [0, 0], sizes = [1, 8], strides = [1, 1]} : vector<4x8xf32> to vector<1x8xf32>
    %4 = vector.broadcast %2 : vector<128x1xf32> to vector<128x8xf32>
    %5 = vector.broadcast %3 : vector<1x8xf32> to vector<128x8xf32>
    %6 = arith.mulf %4, %5 : vector<128x8xf32>
    %7 = vector.extract_strided_slice %1 {offsets = [0, 1], sizes = [128, 1], strides = [1, 1]} : vector<128x4xf32> to vector<128x1xf32>
    %8 = vector.extract_strided_slice %0 {offsets = [1, 0], sizes = [1, 8], strides = [1, 1]} : vector<4x8xf32> to vector<1x8xf32>
    %9 = vector.broadcast %7 : vector<128x1xf32> to vector<128x8xf32>
    %10 = vector.broadcast %8 : vector<1x8xf32> to vector<128x8xf32>
    %11 = arith.mulf %9, %10 : vector<128x8xf32>
    %12 = arith.addf %6, %11 : vector<128x8xf32>
    %13 = vector.extract_strided_slice %1 {offsets = [0, 2], sizes = [128, 1], strides = [1, 1]} : vector<128x4xf32> to vector<128x1xf32>
    %14 = vector.extract_strided_slice %0 {offsets = [2, 0], sizes = [1, 8], strides = [1, 1]} : vector<4x8xf32> to vector<1x8xf32>
    %15 = vector.broadcast %13 : vector<128x1xf32> to vector<128x8xf32>
    %16 = vector.broadcast %14 : vector<1x8xf32> to vector<128x8xf32>
    %17 = arith.mulf %15, %16 : vector<128x8xf32>
    %18 = arith.addf %12, %17 : vector<128x8xf32>
    %19 = vector.extract_strided_slice %1 {offsets = [0, 3], sizes = [128, 1], strides = [1, 1]} : vector<128x4xf32> to vector<128x1xf32>
    %20 = vector.extract_strided_slice %0 {offsets = [3, 0], sizes = [1, 8], strides = [1, 1]} : vector<4x8xf32> to vector<1x8xf32>
    %21 = vector.broadcast %19 : vector<128x1xf32> to vector<128x8xf32>
    %22 = vector.broadcast %20 : vector<1x8xf32> to vector<128x8xf32>
    %23 = arith.mulf %21, %22 : vector<128x8xf32>
    %24 = arith.addf %18, %23 : vector<128x8xf32>
    %c0_3 = arith.constant 0 : index
    %c0_4 = arith.constant 0 : index
    %25 = vector.load %arg2[%c0_3, %c0_4] : memref<128x1xf32, #tpu.memory_space<vmem>>, vector<128x1xf32>
    %26 = vector.broadcast %25 : vector<128x1xf32> to vector<128x8xf32>
    %27 = arith.addf %24, %26 : vector<128x8xf32>
    %cst = arith.constant 0.000000e+00 : f32
    %28 = vector.broadcast %cst : f32 to vector<128x8xf32>
    %29 = arith.maximumf %27, %28 : vector<128x8xf32>
    %c0_5 = arith.constant 0 : index
    %c0_6 = arith.constant 0 : index
    %30 = vector.load %arg3[%c0_5, %c0_6] : memref<128x2xf32, #tpu.memory_space<vmem>>, vector<128x2xf32>
    %31 = vector.extract_strided_slice %30 {offsets = [0, 0], sizes = [128, 1], strides = [1, 1]} : vector<128x2xf32> to vector<128x1xf32>
    %32 = vector.broadcast %31 : vector<128x1xf32> to vector<128x8xf32>
    %33 = arith.mulf %32, %29 : vector<128x8xf32>
    %cst_7 = arith.constant dense<0.000000e+00> : vector<8xf32>
    %34 = vector.multi_reduction <add>, %33, %cst_7 [0] : vector<128x8xf32> to vector<8xf32>
    %35 = vector.shape_cast %34 : vector<8xf32> to vector<1x8xf32>
    %c0_8 = arith.constant 0 : index
    %c0_9 = arith.constant 0 : index
    %36 = memref.load %arg4[%c0_8, %c0_9] : memref<1x2xf32, #tpu.memory_space<smem>>
    %37 = vector.broadcast %36 : f32 to vector<1x8xf32>
    %38 = arith.addf %35, %37 : vector<1x8xf32>
    %cst_10 = arith.constant dense<0xFF800000> : vector<1xf32>
    %39 = vector.multi_reduction <maximumf>, %38, %cst_10 [1] : vector<1x8xf32> to vector<1xf32>
    %40 = vector.shape_cast %39 : vector<1xf32> to vector<1x1xf32>
    %41 = vector.broadcast %40 : vector<1x1xf32> to vector<1x8xf32>
    %42 = arith.subf %38, %41 : vector<1x8xf32>
    %43 = math.exp %42 : vector<1x8xf32>
    %cst_11 = arith.constant dense<0.000000e+00> : vector<1xf32>
    %44 = vector.multi_reduction <add>, %43, %cst_11 [1] : vector<1x8xf32> to vector<1xf32>
    %45 = vector.shape_cast %44 : vector<1xf32> to vector<1x1xf32>
    %cst_12 = arith.constant 1.000000e+00 : f32
    %46 = vector.broadcast %cst_12 : f32 to vector<1x1xf32>
    %47 = arith.divf %46, %45 : vector<1x1xf32>
    %48 = vector.broadcast %47 : vector<1x1xf32> to vector<1x8xf32>
    %49 = arith.mulf %43, %48 : vector<1x8xf32>
    %c0_13 = arith.constant 0 : index
    %c0_14 = arith.constant 0 : index
    %50 = vector.load %arg5[%c0_13, %c0_14] : memref<2x8xf32, #tpu.memory_space<vmem>>, vector<1x8xf32>
    tpu.vector_store %arg5[%c0_13, %c0_14], %49 {strides = array<i32>} : memref<2x8xf32, #tpu.memory_space<vmem>>, vector<1x8xf32>,
    %51 = vector.extract_strided_slice %30 {offsets = [0, 1], sizes = [128, 1], strides = [1, 1]} : vector<128x2xf32> to vector<128x1xf32>
    %52 = vector.broadcast %51 : vector<128x1xf32> to vector<128x8xf32>
    %53 = arith.mulf %52, %29 : vector<128x8xf32>
    %cst_15 = arith.constant dense<0.000000e+00> : vector<8xf32>
    %54 = vector.multi_reduction <add>, %53, %cst_15 [0] : vector<128x8xf32> to vector<8xf32>
    %55 = vector.shape_cast %54 : vector<8xf32> to vector<1x8xf32>
    %c0_16 = arith.constant 0 : index
    %c1 = arith.constant 1 : index
    %56 = memref.load %arg4[%c0_16, %c1] : memref<1x2xf32, #tpu.memory_space<smem>>
    %57 = vector.broadcast %56 : f32 to vector<1x8xf32>
    %58 = arith.addf %55, %57 : vector<1x8xf32>
    %cst_17 = arith.constant dense<0xFF800000> : vector<1xf32>
    %59 = vector.multi_reduction <maximumf>, %58, %cst_17 [1] : vector<1x8xf32> to vector<1xf32>
    %60 = vector.shape_cast %59 : vector<1xf32> to vector<1x1xf32>
    %61 = vector.broadcast %60 : vector<1x1xf32> to vector<1x8xf32>
    %62 = arith.subf %58, %61 : vector<1x8xf32>
    %63 = math.exp %62 : vector<1x8xf32>
    %cst_18 = arith.constant dense<0.000000e+00> : vector<1xf32>
    %64 = vector.multi_reduction <add>, %63, %cst_18 [1] : vector<1x8xf32> to vector<1xf32>
    %65 = vector.shape_cast %64 : vector<1xf32> to vector<1x1xf32>
    %cst_19 = arith.constant 1.000000e+00 : f32
    %66 = vector.broadcast %cst_19 : f32 to vector<1x1xf32>
    %67 = arith.divf %66, %65 : vector<1x1xf32>
    %68 = vector.broadcast %67 : vector<1x1xf32> to vector<1x8xf32>
    %69 = arith.mulf %63, %68 : vector<1x8xf32>
    %c1_20 = arith.constant 1 : index
    %c0_21 = arith.constant 0 : index
    %70 = vector.load %arg5[%c1_20, %c0_21] : memref<2x8xf32, #tpu.memory_space<vmem>>, vector<1x8xf32>
    tpu.vector_store %arg5[%c1_20, %c0_21], %69 {strides = array<i32>} : memref<2x8xf32, #tpu.memory_space<vmem>>, vector<1x8xf32>,
    return
  }
}

</mosaic_0001>

<bundles_post_ra>
// kernel: tpu_custom_call.1
= control target key start
LH: loop header
LB: loop body
LE: loop exit
PB: predicated region body
PF: predicated region fallthrough
CT: control target
= control target key end

     0   :  { %10 = vsyncpa [#allocation4], 0  ;;  %s1591_s0 = inlined_call_operand.vmem [shape: f32[4,8], index: 0, kind: input, shape index: {}]   ;;  %s1592_s1 = inlined_call_operand.vmem [shape: f32[128,4], index: 1, kind: input, shape index: {}]   ;;  %s1593_s2 = inlined_call_operand.vmem [shape: f32[128,1], index: 2, kind: input, shape index: {}]   ;;  %s1594_s3 = inlined_call_operand.vmem [shape: f32[128,2], index: 3, kind: input, shape index: {}]   ;;  %s1595_s4 = inlined_call_operand.vmem [shape: f32[1,2], index: 4, kind: input, shape index: {}]   ;;  %s1596_s5 = inlined_call_operand.hbm [shape: f32[2,8], index: 5, kind: output, shape index: {}]  }
   0x1   :  { %11 = vsyncpa [#allocation3], 0  ;;  %s26_s20 = sshll.u32 %s1595_s4, 4  ;;  %s27_s20 = int_to_ptr.vmem [resolvable:$true] %s26_s20 }
   0x2   :  { %s948_s21 = scalar_lea.vmem %s27_s20, 16  ;;  %p953_p1 = scmp.lt.s32.totalorder %s27_s20, %s27_s20 }
   0x3   :  { %p949_p0 = scmp.ne.s32.totalorder %s27_s20, %s948_s21  ;;  %p954_p2 = scmp.lt.s32.totalorder %s948_s21, %s948_s21 }
   0x5   :  { %p955_p3 = por %p954_p2, %p953_p1 }
   0x7   :  { %p956_p4 = pnand %p955_p3, %p949_p0 }
   0x9   :  { %959 = shalt.err (!%p956_p4)
}
   0xa   :  { %s986_s22 = smov [#allocation2]  }
   0xb   :  { %29 = dma.vmem_to_smem %s27_s20, 16, %s986_s22, [#allocation4]  }
   0xc   :  { %982 = dma.done.wait [#allocation4], 16  }
   0xd   :  { %983 = vsyncadd [#allocation4], 4294967280 }
   0xe   :  { %33 = sfence }
   0xf   :  { %v1028_v0 = vld [vmem:[%s1592_s1 + $0x10] sm:$0xff]  ;;  %v1033_v1 = vld [vmem:[%s1592_s1 + $0x8] sm:$0xff]  ;;  %v987_v2 = vmov 2   ;;  %v1599_v3 = vmov 0   ;;  %v38_v4 = vld [vmem:[%s1592_s1 + $0x18] sm:$0xff]  ;;  %v1601_v18 = vmov 3  }
  0x10   :  { %904 = vset.pattern.permute.xlu0 %v987_v2  ;;  %901 = vset.pattern.permute.xlu1 %v1599_v3  ;;  %v1044_v5 = vld [vmem:[%s1592_s1 + $0x20] sm:$0xff]  ;;  %v40_v6 = vld [vmem:[%s1592_s1 + $0x28] sm:$0xff]  ;;  %v1053_v7 = vld [vmem:[%s1592_s1 + $0x30] sm:$0xff]  ;;  %v1597_v19 = vmov 1   ;;  %vm691_vm0 = vcmask 64512   ;;  %s894_s12 = sld [smem:[#allocation2 + $0x1]] }
  0x11   :  { %63 = vperm.xlu1 %901, %v1028_v0   ;;  %256 = vperm.xlu0 %904, %v1033_v1   ;;  %v1059_v8 = vld [vmem:[%s1592_s1 + $0x38] sm:$0xff]  ;;  %v1064_v9 = vld [vmem:[%s1592_s1 + $0x40] sm:$0xff]  ;;  %v1071_v10 = vld [vmem:[%s1592_s1 + $0x48] sm:$0xff]  ;;  %vm744_vm1 = vcmask 57344   ;;  %s991_s13 = smov [#allocation5]  }
  0x12   :  { %v1076_v11 = vld [vmem:[%s1592_s1 + $0x50] sm:$0xff]  ;;  %v1083_v12 = vld [vmem:[%s1592_s1 + $0x58] sm:$0xff]  ;;  %v1088_v13 = vld [vmem:[%s1592_s1 + $0x60] sm:$0xff]  ;;  %s885_s14 = sshll.u32 %s991_s13, 4  ;;  %s886_s14 = int_to_ptr.vmem [resolvable:$true] %s885_s14 }
  0x13   :  { %v1095_v14 = vld [vmem:[%s1592_s1 + $0x68] sm:$0xff]  ;;  %v1100_v15 = vld [vmem:[%s1592_s1 + $0x70] sm:$0xff]  ;;  %v1107_v16 = vld [vmem:[%s1592_s1 + $0x78] sm:$0xff]  ;;  %s960_s15 = scalar_lea.vmem %s886_s14, 32  ;;  %p965_p6 = scmp.lt.s32.totalorder %s886_s14, %s886_s14 }
  0x14   :  { %v35_v17 = vld [vmem:[%s1592_s1] sm:$0xff]  ;;  %v581_v20 = vld [vmem:[%s1594_s3 + $0x10] sm:$0xff]  ;;  %v1165_v25 = vld [vmem:[%s1594_s3 + $0x68] sm:$0xff]  ;;  %p961_p5 = scmp.ne.s32.totalorder %s886_s14, %s960_s15  ;;  %p966_p7 = scmp.lt.s32.totalorder %s960_s15, %s960_s15 }
  0x15   :  { %68 = vperm.xlu1 %901, %v38_v4   ;;  %268 = vperm.xlu0 %904, %v1044_v5   ;;  %v1137_v21 = vld [vmem:[%s1594_s3 + $0x20] sm:$0xff]  ;;  %v1144_v22 = vld [vmem:[%s1594_s3 + $0x30] sm:$0xff]  ;;  %v452_v26 = vld [vmem:[%s1593_s2 + $0x8] sm:$0xff] }
  0x16   :  { %v1151_v23 = vld [vmem:[%s1594_s3 + $0x40] sm:$0xff]  ;;  %v1158_v24 = vld [vmem:[%s1594_s3 + $0x50] sm:$0xff]  ;;  %v454_v28 = vld [vmem:[%s1593_s2 + $0x18] sm:$0xff]  ;;  %p967_p8 = por %p966_p7, %p965_p6 }
  0x17   :  { %v453_v27 = vld [vmem:[%s1593_s2 + $0x10] sm:$0xff]  ;;  %v579_v29 = vld [vmem:[%s1594_s3] sm:$0xff]  ;;  %v580_v35 = vld [vmem:[%s1594_s3 + $0x8] sm:$0xff] }
  0x18   :  { %v451_v34 = vld [vmem:[%s1593_s2] sm:$0xff]  ;;  %v582_v41 = vld [vmem:[%s1594_s3 + $0x18] sm:$0xff]  ;;  %v457_v44 = vld [vmem:[%s1593_s2 + $0x30] sm:$0xff]  ;;  %p968_p9 = pnand %p967_p8, %p961_p5 }
  0x19   :  { %78 = vperm.xlu1 %901, %v40_v6   ;;  %276 = vperm.xlu0 %904, %v1053_v7   ;;  %v455_v40 = vld [vmem:[%s1593_s2 + $0x20] sm:$0xff]  ;;  %v584_v47 = vld [vmem:[%s1594_s3 + $0x28] sm:$0xff]  ;;  %v1258_v54 = vld [vmem:[%s1594_s3 + $0x38] sm:$0xff] }
  0x1a   :  { %v459_v50 = vld [vmem:[%s1593_s2 + $0x40] sm:$0xff]  ;;  %v456_v51 = vld [vmem:[%s1593_s2 + $0x28] sm:$0xff]  ;;  %v461_v57 = vld [vmem:[%s1593_s2 + $0x50] sm:$0xff] }
  0x1b   :  { %v1276_v60 = vld [vmem:[%s1594_s3 + $0x48] sm:$0xff]  ;;  %v463_v63 = vld [vmem:[%s1593_s2 + $0x60] sm:$0xff] }
  0x1d   :  { %88 = vperm.xlu1 %901, %v1059_v8   ;;  %284 = vperm.xlu0 %904, %v1064_v9  }
  0x21   :  { %98 = vperm.xlu1 %901, %v1071_v10   ;;  %292 = vperm.xlu0 %904, %v1076_v11  }
  0x25   :  { %108 = vperm.xlu1 %901, %v1083_v12   ;;  %300 = vperm.xlu0 %904, %v1088_v13  }
  0x29   :  { %118 = vperm.xlu1 %901, %v1095_v14   ;;  %308 = vperm.xlu0 %904, %v1100_v15  }
  0x2d   :  { %128 = vperm.xlu1 %901, %v1107_v16   ;;  %905 = vset.pattern.permute.xlu0 %v1601_v18 }
  0x2e   :  { %352 = vperm.xlu0 %905, %v35_v17  }
  0x31   :  { %902 = vset.pattern.permute.xlu1 %v1597_v19 }
  0x32   :  { %156 = vperm.xlu1 %902, %v1033_v1   ;;  %364 = vperm.xlu0 %905, %v38_v4  }
  0x36   :  { %160 = vperm.xlu1 %902, %v1028_v0   ;;  %372 = vperm.xlu0 %905, %v40_v6  }
  0x3a   :  { %168 = vperm.xlu1 %902, %v1044_v5   ;;  %376 = vperm.xlu0 %905, %v1053_v7  }
  0x3e   :  { %176 = vperm.xlu1 %902, %v1053_v7   ;;  %909 = vset.pattern.permute.xlu0 %v1597_v19 }
  0x3f   :  { %152 = vperm.xlu0 %909, %v35_v17  }
  0x42   :  { %184 = vperm.xlu1 %902, %v1064_v9  }
  0x43   :  { %164 = vperm.xlu0 %909, %v38_v4  }
  0x46   :  { %192 = vperm.xlu1 %902, %v1076_v11  }
  0x47   :  { %172 = vperm.xlu0 %909, %v40_v6  }
  0x4a   :  { %200 = vperm.xlu1 %902, %v1088_v13  }
  0x4b   :  { %180 = vperm.xlu0 %909, %v1059_v8  }
  0x4e   :  { %208 = vperm.xlu1 %902, %v1100_v15  }
  0x4f   :  { %188 = vperm.xlu0 %909, %v1071_v10  }
  0x52   :  { %903 = vset.pattern.permute.xlu1 %v987_v2 }
  0x53   :  { %196 = vperm.xlu0 %909, %v1083_v12   ;;  %252 = vperm.xlu1 %903, %v35_v17  }
  0x57   :  { %204 = vperm.xlu0 %909, %v1095_v14   ;;  %260 = vperm.xlu1 %903, %v1028_v0  }
  0x5b   :  { %212 = vperm.xlu0 %909, %v1107_v16   ;;  %264 = vperm.xlu1 %903, %v38_v4  }
  0x5f   :  { %755 = vperm.xlu0 %909, %v581_v20   ;;  %272 = vperm.xlu1 %903, %v40_v6  }
  0x63   :  { %763 = vperm.xlu0 %909, %v1137_v21   ;;  %280 = vperm.xlu1 %903, %v1059_v8  }
  0x67   :  { %771 = vperm.xlu0 %909, %v1144_v22   ;;  %288 = vperm.xlu1 %903, %v1071_v10  }
  0x6b   :  { %779 = vperm.xlu0 %909, %v1151_v23   ;;  %296 = vperm.xlu1 %903, %v1083_v12  }
  0x6f   :  { %787 = vperm.xlu0 %909, %v1158_v24   ;;  %304 = vperm.xlu1 %903, %v1095_v14  }
  0x73   :  { %799 = vperm.xlu0 %909, %v1165_v25   ;;  %312 = vperm.xlu1 %903, %v1107_v16  }
  0x77   :  { %937 = vset.pattern.permute.xlu0 %v1599_v3  ;;  %906 = vset.pattern.permute.xlu1 %v1601_v18 }
  0x78   :  { %53 = vperm.xlu0 %937, %v35_v17   ;;  %356 = vperm.xlu1 %906, %v1033_v1  }
  0x7c   :  { %58 = vperm.xlu0 %937, %v1033_v1   ;;  %360 = vperm.xlu1 %906, %v1028_v0   ;;  %v1295_v1 = vld [vmem:[%s1594_s3 + $0x58] sm:$0xff] }
  0x80   :  { %73 = vperm.xlu0 %937, %v1044_v5   ;;  %368 = vperm.xlu1 %906, %v1044_v5   ;;  %v1307_v5 = vld [vmem:[%s1594_s3 + $0x60] sm:$0xff] }
  0x84   :  { %83 = vperm.xlu0 %937, %v1053_v7   ;;  %907 = vset.pattern.permute.xlu1 %v1599_v3  ;;  %v458_v7 = vld [vmem:[%s1593_s2 + $0x38] sm:$0xff] }
  0x85   :  { %474 = vperm.xlu1 %907, %v452_v26   ;;  %v131_v26 = vlaneseq }
  0x88   :  { %93 = vperm.xlu0 %937, %v1064_v9  }
  0x89   :  { %479 = vperm.xlu1 %907, %v453_v27  }
  0x8c   :  { %103 = vperm.xlu0 %937, %v1076_v11  }
  0x8d   :  { %484 = vperm.xlu1 %907, %v454_v28  }
  0x90   :  { %v1192_v30 = vpop.permute.xlu1 %63  ;;  %113 = vperm.xlu0 %937, %v1088_v13   ;;  %v1195_v31 = vpop.permute.xlu0 %256 }
  0x91   :  { %597 = vperm.xlu1 %907, %v579_v29  }
  0x94   :  { %v1197_v32 = vpop.permute.xlu1 %68  ;;  %123 = vperm.xlu0 %937, %v1100_v15   ;;  %v1200_v33 = vpop.permute.xlu0 %268 }
  0x95   :  { %908 = vset.pattern.permute.xlu1 %v1597_v19 }
  0x96   :  { %747 = vperm.xlu1 %908, %v579_v29   ;;  %v132_v29 = vshrl.u32 %v131_v26, 7 }
  0x98   :  { %v1209_v36 = vpop.permute.xlu1 %78  ;;  %469 = vperm.xlu0 %937, %v451_v34   ;;  %v1211_v37 = vpop.permute.xlu0 %276  ;;  %v217_v34 = vsub.s32 1, %v132_v29 }
  0x9a   :  { %751 = vperm.xlu1 %908, %v580_v35  }
  0x9c   :  { %v1213_v38 = vpop.permute.xlu1 %88  ;;  %602 = vperm.xlu0 %937, %v580_v35   ;;  %v1215_v39 = vpop.permute.xlu0 %284 }
  0x9e   :  { %910 = vset.pattern.permute.xlu1 %v1599_v3 }
  0x9f   :  { %489 = vperm.xlu1 %910, %v455_v40  }
  0xa0   :  { %v1224_v42 = vpop.permute.xlu1 %98  ;;  %612 = vperm.xlu0 %937, %v582_v41   ;;  %v1226_v43 = vpop.permute.xlu0 %292 }
  0xa3   :  { %607 = vperm.xlu1 %910, %v581_v20   ;;  %v1324_v20 = vld [vmem:[%s1594_s3 + $0x78] sm:$0xff] }
  0xa4   :  { %v1231_v45 = vpop.permute.xlu1 %108  ;;  %499 = vperm.xlu0 %937, %v457_v44   ;;  %v1233_v46 = vpop.permute.xlu0 %300  ;;  %v417_v44 = vsub.s32 3, %v132_v29 }
  0xa5   :  { %1603 = vst [vmem:[#allocation8_spill] sm:$0xff] %v1233_v46 }
  0xa7   :  { %911 = vset.pattern.permute.xlu1 %v1601_v18 }
  0xa8   :  { %v1239_v48 = vpop.permute.xlu1 %118  ;;  %380 = vperm.xlu1 %911, %v1059_v8   ;;  %v1242_v49 = vpop.permute.xlu0 %308  ;;  %622 = vperm.xlu0 %937, %v584_v47  }
  0xa9   :  { %1604 = vst [vmem:[#allocation9_spill] sm:$0xff] %v1242_v49 }
  0xac   :  { %v1250_v52 = vpop.permute.xlu1 %128  ;;  %912 = vset.pattern.permute.xlu1 %v1599_v3  ;;  %509 = vperm.xlu0 %937, %v459_v50   ;;  %v317_v50 = vsub.s32 2, %v132_v29 }
  0xad   :  { %494 = vperm.xlu1 %912, %v456_v51   ;;  %v1253_v53 = vpop.permute.xlu0 %352 }
  0xb0   :  { %632 = vperm.xlu0 %937, %v1258_v54  }
  0xb1   :  { %v1261_v55 = vpop.permute.xlu1 %156  ;;  %913 = vset.pattern.permute.xlu1 %v1597_v19  ;;  %v1264_v56 = vpop.permute.xlu0 %364 }
  0xb2   :  { %759 = vperm.xlu1 %913, %v582_v41   ;;  %v133_v41 = vsub.s32 0, %v132_v29 }
  0xb4   :  { %519 = vperm.xlu0 %937, %v461_v57  }
  0xb5   :  { %v1269_v58 = vpop.permute.xlu1 %160  ;;  %v1271_v59 = vpop.permute.xlu0 %372 }
  0xb6   :  { %914 = vset.pattern.permute.xlu1 %v1601_v18 }
  0xb7   :  { %384 = vperm.xlu1 %914, %v1064_v9   ;;  %v466_v9 = vld [vmem:[%s1593_s2 + $0x78] sm:$0xff] }
  0xb8   :  { %642 = vperm.xlu0 %937, %v1276_v60  }
  0xb9   :  { %v1281_v61 = vpop.permute.xlu1 %168  ;;  %v1283_v62 = vpop.permute.xlu0 %376 }
  0xbb   :  { %915 = vset.pattern.permute.xlu1 %v1599_v3 }
  0xbc   :  { %617 = vperm.xlu1 %915, %v1137_v21   ;;  %529 = vperm.xlu0 %937, %v463_v63  }
  0xbd   :  { %v1290_v0 = vpop.permute.xlu1 %176 }
  0xbe   :  { %v1297_v2 = vpop.permute.xlu0 %152 }
  0xc0   :  { %916 = vset.pattern.permute.xlu1 %v1601_v18  ;;  %652 = vperm.xlu0 %937, %v1295_v1  }
  0xc1   :  { %v1301_v4 = vpop.permute.xlu1 %184  ;;  %388 = vperm.xlu1 %916, %v1071_v10  }
  0xc2   :  { %v165_v6 = vpop.permute.xlu0 %164 }
  0xc4   :  { %657 = vperm.xlu0 %937, %v1307_v5  }
  0xc5   :  { %v1313_v8 = vpop.permute.xlu1 %192  ;;  %917 = vset.pattern.permute.xlu1 %v1599_v3 }
  0xc6   :  { %v173_v10 = vpop.permute.xlu0 %172  ;;  %504 = vperm.xlu1 %917, %v458_v7  }
  0xc8   :  { %544 = vperm.xlu0 %937, %v466_v9  }
  0xc9   :  { %v1319_v17 = vpop.permute.xlu1 %200 }
  0xca   :  { %v181_v21 = vpop.permute.xlu0 %180  ;;  %918 = vset.pattern.permute.xlu1 %v1597_v19 }
  0xcb   :  { %767 = vperm.xlu1 %918, %v584_v47   ;;  %v34_v47 = vld [vmem:[%s1591_s0] sm:$0xf] }
  0xcc   :  { %672 = vperm.xlu0 %937, %v1324_v20   ;;  %v1339_v51 = vrot.slane %v34_v47, %v217_v34  ;;  %v1344_v63 = vrot.slane %v34_v47, %v133_v41  ;;  %v1346_v7 = vrot.slane %v34_v47, %v417_v44  ;;  %v1349_v26 = vrot.slane %v34_v47, %v317_v50 }
  0xcd   :  { %v1328_v27 = vpop.permute.xlu1 %208  ;;  %v1606_v50 = vmov 0  }
  0xce   :  { %1605 = vst [vmem:[#allocation10_spill] sm:$0xff] %v1328_v27  ;;  %v189_v28 = vpop.permute.xlu0 %188  ;;  %v222_v9 = vmul.f32 %v1339_v51, %v165_v6  ;;  %v422_v34 = vmul.f32 %v1346_v7, %v1264_v56  ;;  %v224_v44 = vmul.f32 %v1339_v51, %v173_v10  ;;  %v460_v6 = vld [vmem:[%s1593_s2 + $0x48] sm:$0xff]  ;;  %v226_v10 = vmul.f32 %v1339_v51, %v181_v21 }
  0xcf   :  { %919 = vset.pattern.permute.xlu1 %v1601_v18  ;;  %v228_v27 = vmul.f32 %v1339_v51, %v189_v28 }
  0xd0   :  { %392 = vperm.xlu1 %919, %v1076_v11   ;;  %939 = vset.pattern.permute.xlu0 %v1597_v19  ;;  %v138_v19 = vmul.f32 %v1344_v63, %v1197_v32  ;;  %v140_v32 = vmul.f32 %v1344_v63, %v1209_v36  ;;  %v142_v36 = vmul.f32 %v1344_v63, %v1213_v38 }
  0xd2   :  { %v197_v35 = vpop.permute.xlu0 %196  ;;  %v1333_v40 = vpop.permute.xlu1 %252  ;;  %v238_v41 = vadd.f32 %v222_v9, %v138_v19  ;;  %v240_v19 = vadd.f32 %v224_v44, %v140_v32  ;;  %v1607_v44 = vmov 1  }
  0xd4   :  { %920 = vset.pattern.permute.xlu1 %v1599_v3 }
  0xd5   :  { %627 = vperm.xlu1 %920, %v1144_v22  }
  0xd6   :  { %v205_v11 = vpop.permute.xlu0 %204  ;;  %v1342_v57 = vpop.permute.xlu1 %260 }
  0xd9   :  { %921 = vset.pattern.permute.xlu1 %v1601_v18 }
  0xda   :  { %v213_v29 = vpop.permute.xlu0 %212  ;;  %396 = vperm.xlu1 %921, %v1083_v12   ;;  %v265_v22 = vpop.permute.xlu1 %264  ;;  %v424_v12 = vmul.f32 %v1346_v7, %v1271_v59  ;;  %v242_v59 = vadd.f32 %v226_v10, %v142_v36 }
  0xdb   :  { %v322_v3 = vmul.f32 %v1349_v26, %v265_v22 }
  0xdd   :  { %v338_v47 = vadd.f32 %v322_v3, %v238_v41 }
  0xde   :  { %922 = vset.pattern.permute.xlu1 %v1606_v50  ;;  %v273_v18 = vpop.permute.xlu1 %272  ;;  %v1367_v56 = vpop.permute.xlu0 %755 }
  0xdf   :  { %v324_v9 = vmul.f32 %v1349_v26, %v273_v18  ;;  %514 = vperm.xlu1 %922, %v460_v6   ;;  %v1371_v22 = vadd.f32 %v422_v34, %v338_v47  ;;  %v144_v18 = vmul.f32 %v1344_v63, %v1224_v42  ;;  %v230_v47 = vmul.f32 %v1339_v51, %v197_v35 }
  0xe0   :  { %v148_v35 = vmul.f32 %v1344_v63, %v1239_v48 }
  0xe1   :  { %v340_v3 = vadd.f32 %v324_v9, %v240_v19  ;;  %v244_v32 = vadd.f32 %v228_v27, %v144_v18  ;;  %v1608_v19 = vmov 3   ;;  %v232_v9 = vmul.f32 %v1339_v51, %v205_v11 }
  0xe2   :  { %v281_v41 = vpop.permute.xlu1 %280  ;;  %v1375_v49 = vpop.permute.xlu0 %763  ;;  %v150_v11 = vmul.f32 %v1344_v63, %v1250_v52  ;;  %v219_v52 = vmul.f32 %v1339_v51, %v1297_v2 }
  0xe3   :  { %v326_v46 = vmul.f32 %v1349_v26, %v281_v41  ;;  %923 = vset.pattern.permute.xlu1 %v1607_v44  ;;  %v1380_v21 = vadd.f32 %v424_v12, %v340_v3  ;;  %v146_v12 = vmul.f32 %v1344_v63, %v1231_v45  ;;  %v234_v41 = vmul.f32 %v1339_v51, %v213_v29  ;;  %v462_v29 = vld [vmem:[%s1593_s2 + $0x58] sm:$0xff] }
  0xe4   :  { %775 = vperm.xlu1 %923, %v1258_v54  }
  0xe5   :  { %v1385_v34 = vadd.f32 %v326_v46, %v242_v59  ;;  %v246_v54 = vadd.f32 %v230_v47, %v146_v12 }
  0xe6   :  { %v289_v38 = vpop.permute.xlu1 %288  ;;  %v1387_v6 = vpop.permute.xlu0 %771 }
  0xe7   :  { %v328_v28 = vmul.f32 %v1349_v26, %v289_v38 }
  0xe8   :  { %924 = vset.pattern.permute.xlu1 %v1608_v19 }
  0xe9   :  { %v1394_v10 = vadd.f32 %v328_v28, %v244_v32  ;;  %400 = vperm.xlu1 %924, %v1088_v13   ;;  %v248_v13 = vadd.f32 %v232_v9, %v148_v35  ;;  %v250_v32 = vadd.f32 %v234_v41, %v150_v11  ;;  %v320_v41 = vmul.f32 %v1349_v26, %v1195_v31 }
  0xea   :  { %v297_v42 = vpop.permute.xlu1 %296  ;;  %v1397_v46 = vpop.permute.xlu0 %779  ;;  %v321_v31 = vmul.f32 %v1349_v26, %v1342_v57 }
  0xeb   :  { %v330_v27 = vmul.f32 %v1349_v26, %v297_v42 }
  0xed   :  { %v1403_v36 = vadd.f32 %v330_v27, %v246_v54  ;;  %925 = vset.pattern.permute.xlu1 %v1606_v50  ;;  %v419_v54 = vmul.f32 %v1346_v7, %v1253_v53 }
  0xee   :  { %637 = vperm.xlu1 %925, %v1151_v23   ;;  %v305_v45 = vpop.permute.xlu1 %304  ;;  %v1407_v3 = vpop.permute.xlu0 %787 }
  0xef   :  { %v332_v59 = vmul.f32 %v1349_v26, %v305_v45  ;;  %v220_v45 = vmul.f32 %v1339_v51, %v1261_v55  ;;  %v223_v55 = vmul.f32 %v1339_v51, %v1281_v61 }
  0xf1   :  { %v1413_v18 = vadd.f32 %v332_v59, %v248_v13 }
  0xf2   :  { %926 = vset.pattern.permute.xlu1 %v1608_v19  ;;  %v313_v48 = vpop.permute.xlu1 %312  ;;  %v1416_v38 = vpop.permute.xlu0 %799 }
  0xf3   :  { %v334_v23 = vmul.f32 %v1349_v26, %v313_v48  ;;  %404 = vperm.xlu1 %926, %v1095_v14   ;;  %v319_v14 = vmul.f32 %v1349_v26, %v1333_v40  ;;  %v221_v40 = vmul.f32 %v1339_v51, %v1269_v58  ;;  %v323_v58 = vmul.f32 %v1349_v26, %v1200_v33 }
  0xf4   :  { %v325_v33 = vmul.f32 %v1349_v26, %v1211_v37 }
  0xf5   :  { %v1420_v47 = vadd.f32 %v334_v23, %v250_v32 }
  0xf7   :  { %v54_v28 = vpop.permute.xlu0 %53  ;;  %927 = vset.pattern.permute.xlu1 %v1606_v50  ;;  %v357_v12 = vpop.permute.xlu1 %356 }
  0xf8   :  { %v135_v42 = vmul.f32 %v1344_v63, %v54_v28  ;;  %524 = vperm.xlu1 %927, %v462_v29   ;;  %v420_v32 = vmul.f32 %v1346_v7, %v357_v12 }
  0xfa   :  { %v235_v9 = vadd.f32 %v219_v52, %v135_v42 }
  0xfb   :  { %v59_v27 = vpop.permute.xlu0 %58  ;;  %v361_v35 = vpop.permute.xlu1 %360 }
  0xfc   :  { %v136_v2 = vmul.f32 %v1344_v63, %v59_v27  ;;  %928 = vset.pattern.permute.xlu1 %v1607_v44  ;;  %v335_v13 = vadd.f32 %v319_v14, %v235_v9  ;;  %v421_v12 = vmul.f32 %v1346_v7, %v361_v35 }
  0xfd   :  { %783 = vperm.xlu1 %928, %v1276_v60   ;;  %v137_v60 = vmul.f32 %v1344_v63, %v1192_v30 }
  0xfe   :  { %v236_v53 = vadd.f32 %v220_v45, %v136_v2  ;;  %v435_v59 = vadd.f32 %v419_v54, %v335_v13  ;;  %v225_v54 = vmul.f32 %v1339_v51, %v1290_v0 }
  0xff   :  { %v74_v11 = vpop.permute.xlu0 %73  ;;  %v369_v48 = vpop.permute.xlu1 %368  ;;  %v237_v28 = vadd.f32 %v221_v40, %v137_v60 }
 0x100   :  { %v139_v23 = vmul.f32 %v1344_v63, %v74_v11  ;;  %v336_v29 = vadd.f32 %v320_v41, %v236_v53  ;;  %v423_v30 = vmul.f32 %v1346_v7, %v369_v48 }
 0x101   :  { %929 = vset.pattern.permute.xlu1 %v1608_v19  ;;  %v337_v27 = vadd.f32 %v321_v31, %v237_v28  ;;  %v465_v31 = vld [vmem:[%s1593_s2 + $0x70] sm:$0xff] }
 0x102   :  { %v239_v52 = vadd.f32 %v223_v55, %v139_v23  ;;  %408 = vperm.xlu1 %929, %v1100_v15   ;;  %v436_v61 = vadd.f32 %v420_v32, %v336_v29  ;;  %v425_v15 = vmul.f32 %v1346_v7, %v1283_v62 }
 0x103   :  { %v84_v42 = vpop.permute.xlu0 %83  ;;  %v437_v0 = vadd.f32 %v421_v12, %v337_v27 }
 0x104   :  { %v141_v57 = vmul.f32 %v1344_v63, %v84_v42  ;;  %v475_v14 = vpop.permute.xlu1 %474  ;;  %v339_v9 = vadd.f32 %v323_v58, %v239_v52 }
 0x105   :  { %v548_v45 = vadd.f32 %v475_v14, %v436_v61 }
 0x106   :  { %v241_v2 = vadd.f32 %v225_v54, %v141_v57  ;;  %930 = vset.pattern.permute.xlu1 %v1606_v50  ;;  %v439_v35 = vadd.f32 %v423_v30, %v339_v9 }
 0x107   :  { %v1464_v13 = vpop.permute.xlu0 %93  ;;  %647 = vperm.xlu1 %930, %v1158_v24   ;;  %v464_v24 = vld [vmem:[%s1593_s2 + $0x68] sm:$0xff] }
 0x108   :  { %v480_v41 = vpop.permute.xlu1 %479  ;;  %v341_v53 = vadd.f32 %v325_v33, %v241_v2 }
 0x109   :  { %v549_v40 = vadd.f32 %v480_v41, %v437_v0 }
 0x10a   :  { %v441_v11 = vadd.f32 %v425_v15, %v341_v53 }
 0x10b   :  { %v565_v48 = vmax.f32 %v549_v40, 0.0  ;;  %v1467_v55 = vpop.permute.xlu0 %103  ;;  %931 = vset.pattern.permute.xlu1 %v1608_v19 }
 0x10c   :  { %412 = vperm.xlu1 %931, %v1107_v16   ;;  %v485_v37 = vpop.permute.xlu1 %484 }
 0x10d   :  { %v812_v62 = vmul.f32 %v1367_v56, %v565_v48  ;;  %v1473_v32 = vadd.f32 %v485_v37, %v1371_v22  ;;  %v564_v22 = vmax.f32 %v548_v45, 0.0 }
 0x10f   :  { %v1478_v23 = vpop.permute.xlu0 %113  ;;  %v829_v15 = vsel %vm691_vm0, %v812_v62, 0.0  ;;  %v566_v2 = vmax.f32 %v1473_v32, 0.0 }
 0x110   :  { %932 = vset.pattern.permute.xlu1 %v1606_v50  ;;  %v598_v29 = vpop.permute.xlu1 %597 }
 0x111   :  { %534 = vperm.xlu1 %932, %v464_v24  }
 0x113   :  { %v1481_v60 = vpop.permute.xlu0 %123 }
 0x115   :  { %933 = vset.pattern.permute.xlu1 %v1607_v44  ;;  %v748_v16 = vpop.permute.xlu1 %747 }
 0x116   :  { %791 = vperm.xlu1 %933, %v1295_v1  }
 0x117   :  { %v470_v56 = vpop.permute.xlu0 %469 }
 0x118   :  { %v547_v19 = vadd.f32 %v470_v56, %v435_v59 }
 0x119   :  { %v752_v58 = vpop.permute.xlu1 %751 }
 0x11a   :  { %v563_v52 = vmax.f32 %v547_v19, 0.0  ;;  %v811_v61 = vmul.f32 %v752_v58, %v564_v22  ;;  %934 = vset.pattern.permute.xlu1 %v1606_v50  ;;  %v227_v58 = vmul.f32 %v1339_v51, %v1301_v4 }
 0x11b   :  { %v603_v28 = vpop.permute.xlu0 %602  ;;  %539 = vperm.xlu1 %934, %v465_v31   ;;  %v143_v31 = vmul.f32 %v1344_v63, %v1464_v13 }
 0x11c   :  { %v675_v12 = vmul.f32 %v598_v29, %v563_v52  ;;  %v810_v42 = vmul.f32 %v748_v16, %v563_v52  ;;  %v676_v54 = vmul.f32 %v603_v28, %v564_v22  ;;  %v827_v30 = vsel %vm691_vm0, %v811_v61, 0.0 }
 0x11d   :  { %v243_v61 = vadd.f32 %v227_v58, %v143_v31 }
 0x11e   :  { %v826_v1 = vsel %vm691_vm0, %v810_v42, 0.0  ;;  %v692_v59 = vsel %vm691_vm0, %v675_v12, 0.0  ;;  %v693_v57 = vsel %vm691_vm0, %v676_v54, 0.0  ;;  %v490_v14 = vpop.permute.xlu1 %489 }
 0x11f   :  { %v828_v9 = vadd.f32 %v827_v30, %v826_v1  ;;  %v694_v27 = vadd.f32 %v693_v57, %v692_v59  ;;  %v551_v45 = vadd.f32 %v490_v14, %v439_v35  ;;  %v613_v33 = vpop.permute.xlu0 %612  ;;  %935 = vset.pattern.permute.xlu1 %v1607_v44 }
 0x120   :  { %795 = vperm.xlu1 %935, %v1307_v5   ;;  %v678_v37 = vmul.f32 %v613_v33, %v566_v2  ;;  %v593_v5 = vld [vmem:[%s1594_s3 + $0x70] sm:$0xff]  ;;  %s729_s3 = sld [smem:[#allocation2]] }
 0x121   :  { %v567_v0 = vmax.f32 %v551_v45, 0.0  ;;  %v830_v41 = vadd.f32 %v829_v15, %v828_v9 }
 0x122   :  { %v608_v53 = vpop.permute.xlu1 %607  ;;  %v697_v32 = vsel %vm691_vm0, %v678_v37, 0.0 }
 0x123   :  { %v814_v40 = vmul.f32 %v1375_v49, %v567_v0  ;;  %v677_v24 = vmul.f32 %v608_v53, %v565_v48  ;;  %v500_v29 = vpop.permute.xlu0 %499 }
 0x124   :  { %v553_v16 = vadd.f32 %v500_v29, %v441_v11  ;;  %936 = vset.pattern.permute.xlu1 %v1606_v50 }
 0x125   :  { %v695_v35 = vsel %vm691_vm0, %v677_v24, 0.0  ;;  %662 = vperm.xlu1 %936, %v1165_v25  }
 0x126   :  { %v696_v62 = vadd.f32 %v695_v35, %v694_v27  ;;  %v569_v56 = vmax.f32 %v553_v16, 0.0 }
 0x127   :  { %v381_v22 = vpop.permute.xlu1 %380  ;;  %v623_v4 = vpop.permute.xlu0 %622 }
 0x128   :  { %v816_v49 = vmul.f32 %v1387_v6, %v569_v56  ;;  %v426_v48 = vmul.f32 %v1346_v7, %v381_v22  ;;  %v698_v11 = vadd.f32 %v697_v32, %v696_v62 }
 0x129   :  { %667 = vperm.xlu1 %936, %v593_v5  }
 0x12a   :  { %v442_v50 = vadd.f32 %v426_v48, %v1385_v34  ;;  %v327_v34 = vmul.f32 %v1349_v26, %v1215_v39 }
 0x12b   :  { %v510_v16 = vpop.permute.xlu0 %509 }
 0x12c   :  { %v495_v19 = vpop.permute.xlu1 %494  ;;  %v343_v13 = vadd.f32 %v327_v34, %v243_v61 }
 0x12d   :  { %v552_v25 = vadd.f32 %v495_v19, %v1380_v21  ;;  %938 = vset.pattern.permute.xlu1 %v1607_v44  ;;  %v833_v44 = vsel %vm691_vm0, %v814_v40, 0.0 }
 0x12e   :  { %803 = vperm.xlu1 %938, %v593_v5  }
 0x12f   :  { %v568_v1 = vmax.f32 %v552_v25, 0.0  ;;  %v633_v5 = vpop.permute.xlu0 %632 }
 0x131   :  { %v760_v52 = vpop.permute.xlu1 %759  ;;  %v680_v57 = vmul.f32 %v623_v4, %v568_v1 }
 0x132   :  { %v813_v6 = vmul.f32 %v760_v52, %v566_v2  ;;  %807 = vperm.xlu1 %938, %v1324_v20  }
 0x133   :  { %v701_v27 = vsel %vm691_vm0, %v680_v57, 0.0 }
 0x134   :  { %v831_v28 = vsel %vm691_vm0, %v813_v6, 0.0 }
 0x135   :  { %v832_v21 = vadd.f32 %v831_v28, %v830_v41 }
 0x136   :  { %v385_v12 = vpop.permute.xlu1 %384 }
 0x137   :  { %v427_v42 = vmul.f32 %v1346_v7, %v385_v12  ;;  %v834_v54 = vadd.f32 %v833_v44, %v832_v21  ;;  %v520_v21 = vpop.permute.xlu0 %519 }
 0x139   :  { %v443_v30 = vadd.f32 %v427_v42, %v343_v13  ;;  %v229_v13 = vmul.f32 %v1339_v51, %v1313_v8 }
 0x13b   :  { %v618_v59 = vpop.permute.xlu1 %617  ;;  %v555_v31 = vadd.f32 %v510_v16, %v443_v30  ;;  %v643_v30 = vpop.permute.xlu0 %642 }
 0x13c   :  { %v679_v20 = vmul.f32 %v618_v59, %v567_v0  ;;  %v837_v0 = vsel %vm691_vm0, %v816_v49, 0.0 }
 0x13d   :  { %v571_v52 = vmax.f32 %v555_v31, 0.0 }
 0x13e   :  { %v699_v14 = vsel %vm691_vm0, %v679_v20, 0.0 }
 0x13f   :  { %v700_v9 = vadd.f32 %v699_v14, %v698_v11  ;;  %v818_v49 = vmul.f32 %v1397_v46, %v571_v52  ;;  %v329_v46 = vmul.f32 %v1349_v26, %v1226_v43  ;;  %v231_v43 = vmul.f32 %v1339_v51, %v1319_v17 }
 0x140   :  { %v389_v39 = vpop.permute.xlu1 %388 }
 0x141   :  { %v428_v45 = vmul.f32 %v1346_v7, %v389_v39  ;;  %v702_v33 = vadd.f32 %v701_v27, %v700_v9  ;;  %v841_v12 = vsel %vm691_vm0, %v818_v49, 0.0 }
 0x143   :  { %v444_v15 = vadd.f32 %v428_v45, %v1394_v10 }
 0x145   :  { %v505_v2 = vpop.permute.xlu1 %504 }
 0x146   :  { %v554_v40 = vadd.f32 %v505_v2, %v442_v50 }
 0x148   :  { %v570_v62 = vmax.f32 %v554_v40, 0.0  ;;  %v1609_v40 = vld [vmem:[#allocation8_spill] sm:$0xff] }
 0x14a   :  { %v768_v41 = vpop.permute.xlu1 %767  ;;  %v682_v22 = vmul.f32 %v633_v5, %v570_v62 }
 0x14b   :  { %v815_v53 = vmul.f32 %v768_v41, %v568_v1 }
 0x14c   :  { %v705_v19 = vsel %vm691_vm0, %v682_v22, 0.0 }
 0x14d   :  { %v835_v37 = vsel %vm691_vm0, %v815_v53, 0.0 }
 0x14e   :  { %v836_v24 = vadd.f32 %v835_v37, %v834_v54  ;;  %v331_v37 = vmul.f32 %v1349_v26, %v1609_v40 }
 0x14f   :  { %v393_v29 = vpop.permute.xlu1 %392 }
 0x150   :  { %v838_v35 = vadd.f32 %v837_v0, %v836_v24  ;;  %v429_v59 = vmul.f32 %v1346_v7, %v393_v29 }
 0x154   :  { %v628_v32 = vpop.permute.xlu1 %627 }
 0x155   :  { %v681_v48 = vmul.f32 %v628_v32, %v569_v56  ;;  %v145_v56 = vmul.f32 %v1344_v63, %v1467_v55 }
 0x157   :  { %v703_v11 = vsel %vm691_vm0, %v681_v48, 0.0  ;;  %v245_v4 = vadd.f32 %v229_v13, %v145_v56 }
 0x158   :  { %v704_v10 = vadd.f32 %v703_v11, %v702_v33  ;;  %v147_v33 = vmul.f32 %v1344_v63, %v1478_v23 }
 0x159   :  { %v397_v25 = vpop.permute.xlu1 %396  ;;  %v345_v14 = vadd.f32 %v329_v46, %v245_v4 }
 0x15a   :  { %v706_v50 = vadd.f32 %v705_v19, %v704_v10  ;;  %v247_v41 = vadd.f32 %v231_v43, %v147_v33  ;;  %v430_v24 = vmul.f32 %v1346_v7, %v397_v25 }
 0x15b   :  { %v445_v27 = vadd.f32 %v429_v59, %v345_v14 }
 0x15c   :  { %v347_v16 = vadd.f32 %v331_v37, %v247_v41  ;;  %v446_v23 = vadd.f32 %v430_v24, %v1403_v36 }
 0x15d   :  { %v557_v2 = vadd.f32 %v520_v21, %v445_v27 }
 0x15e   :  { %v515_v58 = vpop.permute.xlu1 %514 }
 0x15f   :  { %v556_v28 = vadd.f32 %v515_v58, %v444_v15  ;;  %v573_v29 = vmax.f32 %v557_v2, 0.0 }
 0x161   :  { %v572_v1 = vmax.f32 %v556_v28, 0.0  ;;  %v820_v17 = vmul.f32 %v1407_v3, %v573_v29 }
 0x163   :  { %v776_v6 = vpop.permute.xlu1 %775  ;;  %v684_v20 = vmul.f32 %v643_v30, %v572_v1  ;;  %v845_v19 = vsel %vm691_vm0, %v820_v17, 0.0  ;;  %v149_v30 = vmul.f32 %v1344_v63, %v1481_v60 }
 0x164   :  { %v817_v61 = vmul.f32 %v776_v6, %v570_v62 }
 0x165   :  { %v709_v45 = vsel %vm691_vm0, %v684_v20, 0.0  ;;  %v1610_v20 = vld [vmem:[#allocation10_spill] sm:$0xff] }
 0x166   :  { %v839_v34 = vsel %vm691_vm0, %v817_v61, 0.0 }
 0x167   :  { %v840_v44 = vadd.f32 %v839_v34, %v838_v35  ;;  %v530_v35 = vpop.permute.xlu0 %529 }
 0x168   :  { %v401_v42 = vpop.permute.xlu1 %400 }
 0x169   :  { %v842_v54 = vadd.f32 %v841_v12, %v840_v44  ;;  %v431_v0 = vmul.f32 %v1346_v7, %v401_v42 }
 0x16b   :  { %v447_v5 = vadd.f32 %v431_v0, %v347_v16 }
 0x16d   :  { %v638_v57 = vpop.permute.xlu1 %637  ;;  %v559_v25 = vadd.f32 %v530_v35, %v447_v5 }
 0x16e   :  { %v683_v55 = vmul.f32 %v638_v57, %v571_v52 }
 0x16f   :  { %v575_v52 = vmax.f32 %v559_v25, 0.0 }
 0x170   :  { %v707_v9 = vsel %vm691_vm0, %v683_v55, 0.0  ;;  %v233_v55 = vmul.f32 %v1339_v51, %v1610_v20 }
 0x171   :  { %v708_v39 = vadd.f32 %v707_v9, %v706_v50  ;;  %v653_v50 = vpop.permute.xlu0 %652 }
 0x172   :  { %v405_v8 = vpop.permute.xlu1 %404 }
 0x173   :  { %v710_v15 = vadd.f32 %v709_v45, %v708_v39  ;;  %v249_v39 = vadd.f32 %v233_v55, %v149_v30 }
 0x175   :  { %v658_v28 = vpop.permute.xlu0 %657 }
 0x176   :  { %v687_v34 = vmul.f32 %v658_v28, %v575_v52 }
 0x177   :  { %v525_v53 = vpop.permute.xlu1 %524 }
 0x178   :  { %v558_v22 = vadd.f32 %v525_v53, %v446_v23  ;;  %v715_v12 = vsel %vm691_vm0, %v687_v34, 0.0 }
 0x179   :  { %v545_v43 = vpop.permute.xlu0 %544 }
 0x17a   :  { %v574_v58 = vmax.f32 %v558_v22, 0.0 }
 0x17c   :  { %v784_v62 = vpop.permute.xlu1 %783  ;;  %v686_v49 = vmul.f32 %v653_v50, %v574_v58 }
 0x17d   :  { %v819_v32 = vmul.f32 %v784_v62, %v572_v1  ;;  %v673_v62 = vpop.permute.xlu0 %672 }
 0x17e   :  { %v713_v56 = vsel %vm691_vm0, %v686_v49, 0.0 }
 0x17f   :  { %v843_v48 = vsel %vm691_vm0, %v819_v32, 0.0 }
 0x180   :  { %v844_v11 = vadd.f32 %v843_v48, %v842_v54  ;;  %v432_v54 = vmul.f32 %v1346_v7, %v405_v8  ;;  %v1611_v8 = vld [vmem:[#allocation9_spill] sm:$0xff] }
 0x181   :  { %v409_v10 = vpop.permute.xlu1 %408  ;;  %v333_v33 = vmul.f32 %v1349_v26, %v1611_v8 }
 0x182   :  { %v846_v31 = vadd.f32 %v845_v19, %v844_v11  ;;  %v448_v4 = vadd.f32 %v432_v54, %v1413_v18  ;;  %v433_v18 = vmul.f32 %v1346_v7, %v409_v10 }
 0x183   :  { %v349_v63 = vadd.f32 %v333_v33, %v249_v39 }
 0x185   :  { %v449_v51 = vadd.f32 %v433_v18, %v349_v63 }
 0x186   :  { %v648_v6 = vpop.permute.xlu1 %647 }
 0x187   :  { %v685_v61 = vmul.f32 %v648_v6, %v573_v29 }
 0x189   :  { %v711_v36 = vsel %vm691_vm0, %v685_v61, 0.0 }
 0x18a   :  { %v712_v3 = vadd.f32 %v711_v36, %v710_v15 }
 0x18b   :  { %v413_v21 = vpop.permute.xlu1 %412 }
 0x18c   :  { %v714_v44 = vadd.f32 %v713_v56, %v712_v3  ;;  %v434_v14 = vmul.f32 %v1346_v7, %v413_v21  ;;  %v730_v21 = vstv %s729_s3 }
 0x18e   :  { %v716_v42 = vadd.f32 %v715_v12, %v714_v44  ;;  %v450_v15 = vadd.f32 %v434_v14, %v1420_v47 }
 0x190   :  { %v535_v13 = vpop.permute.xlu1 %534  ;;  %v562_v53 = vadd.f32 %v545_v43, %v450_v15 }
 0x191   :  { %v560_v59 = vadd.f32 %v535_v13, %v448_v4  ;;  %v864_v4 = vstv %s894_s12 }
 0x192   :  { %v578_v7 = vmax.f32 %v562_v53, 0.0 }
 0x193   :  { %v576_v45 = vmax.f32 %v560_v59, 0.0 }
 0x194   :  { %v690_v32 = vmul.f32 %v673_v62, %v578_v7 }
 0x195   :  { %v792_v1 = vpop.permute.xlu1 %791  ;;  %v823_v2 = vmul.f32 %v1416_v38, %v576_v45 }
 0x196   :  { %v821_v46 = vmul.f32 %v792_v1, %v574_v58  ;;  %v721_v11 = vsel %vm691_vm0, %v690_v32, 0.0 }
 0x197   :  { %v851_v0 = vsel %vm691_vm0, %v823_v2, 0.0 }
 0x198   :  { %v847_v57 = vsel %vm691_vm0, %v821_v46, 0.0 }
 0x199   :  { %v848_v9 = vadd.f32 %v847_v57, %v846_v31 }
 0x19a   :  { %v540_v27 = vpop.permute.xlu1 %539 }
 0x19b   :  { %v561_v37 = vadd.f32 %v540_v27, %v449_v51 }
 0x19d   :  { %v577_v35 = vmax.f32 %v561_v37, 0.0 }
 0x19f   :  { %v796_v60 = vpop.permute.xlu1 %795 }
 0x1a0   :  { %v822_v41 = vmul.f32 %v796_v60, %v575_v52 }
 0x1a2   :  { %v849_v40 = vsel %vm691_vm0, %v822_v41, 0.0 }
 0x1a3   :  { %v850_v24 = vadd.f32 %v849_v40, %v848_v9 }
 0x1a4   :  { %v663_v29 = vpop.permute.xlu1 %662 }
 0x1a5   :  { %v688_v26 = vmul.f32 %v663_v29, %v576_v45  ;;  %v852_v16 = vadd.f32 %v851_v0, %v850_v24 }
 0x1a7   :  { %v717_v47 = vsel %vm691_vm0, %v688_v26, 0.0 }
 0x1a8   :  { %v718_v5 = vadd.f32 %v717_v47, %v716_v42  ;;  %v668_v23 = vpop.permute.xlu1 %667 }
 0x1a9   :  { %v689_v38 = vmul.f32 %v668_v23, %v577_v35 }
 0x1ab   :  { %v719_v17 = vsel %vm691_vm0, %v689_v38, 0.0 }
 0x1ac   :  { %v720_v22 = vadd.f32 %v719_v17, %v718_v5 }
 0x1ad   :  { %v804_v48 = vpop.permute.xlu1 %803 }
 0x1ae   :  { %v824_v10 = vmul.f32 %v804_v48, %v577_v35  ;;  %v722_v19 = vadd.f32 %v721_v11, %v720_v22 }
 0x1b0   :  { %v853_v25 = vsel %vm691_vm0, %v824_v10, 0.0  ;;  %v723_v50 = vrot.slane %v722_v19, 4 }
 0x1b1   :  { %v854_v31 = vadd.f32 %v853_v25, %v852_v16  ;;  %v808_v58 = vpop.permute.xlu1 %807 }
 0x1b2   :  { %v724_v52 = vadd.f32 %v723_v50, %v722_v19  ;;  %v825_v6 = vmul.f32 %v808_v58, %v578_v7 }
 0x1b4   :  { %v855_v49 = vsel %vm691_vm0, %v825_v6, 0.0  ;;  %v725_v61 = vrot.slane %v724_v52, 2 }
 0x1b5   :  { %v856_v28 = vadd.f32 %v855_v49, %v854_v31 }
 0x1b6   :  { %v726_v36 = vadd.f32 %v725_v61, %v724_v52 }
 0x1b7   :  { %v857_v34 = vrot.slane %v856_v28, 4 }
 0x1b8   :  { %v727_v3 = vrot.slane %v726_v36, 1 }
 0x1b9   :  { %v858_v56 = vadd.f32 %v857_v34, %v856_v28 }
 0x1ba   :  { %v728_v44 = vadd.f32 %v727_v3, %v726_v36 }
 0x1bb   :  { %v859_v12 = vrot.slane %v858_v56, 2 }
 0x1bc   :  { %v731_v42 = vadd.f32 %v730_v21, %v728_v44 }
 0x1bd   :  { %v860_v13 = vadd.f32 %v859_v12, %v858_v56 }
 0x1be   :  { %v732_v54 = vsel %vm691_vm0, %v731_v42, -inf }
 0x1bf   :  { %733 = vmax.xlane.f32.xlu1 %v732_v54  ;;  %v861_v1 = vrot.slane %v860_v13, 1 }
 0x1c1   :  { %v862_v46 = vadd.f32 %v861_v1, %v860_v13 }
 0x1c3   :  { %v865_v30 = vadd.f32 %v864_v4, %v862_v46 }
 0x1c5   :  { %v866_v59 = vsel %vm691_vm0, %v865_v30, -inf }
 0x1c6   :  { %867 = vmax.xlane.f32.xlu0 %v866_v59 }
 0x24c   :  { %v734_v57 = vpop.xlane.xlu1 %733 }
 0x24d   :  { %v735_v20 = vsub.f32 %v731_v42, %v734_v57 }
 0x24f   :  { %v736_v55 = vmul.f32 1.442695, %v735_v20 }
 0x251   :  { %940 = vpow2.f32 %v736_v55 }
 0x253   :  { %v868_v14 = vpop.xlane.xlu0 %867 }
 0x254   :  { %v869_v9 = vsub.f32 %v865_v30, %v868_v14 }
 0x256   :  { %v870_v27 = vmul.f32 1.442695, %v869_v9 }
 0x258   :  { %942 = vpow2.f32 %v870_v27 }
 0x25b   :  { %v941_v39 = vpop.eup %940 }
 0x25c   :  { %v738_v45 = vsel %vm691_vm0, %v941_v39, 0.0 }
 0x25d   :  { %739 = vadd.xlane.f32.xlu0 %v738_v45 }
 0x262   :  { %v943_v8 = vpop.eup %942 }
 0x263   :  { %v872_v33 = vsel %vm691_vm0, %v943_v8, 0.0 }
 0x264   :  { %873 = vadd.xlane.f32.xlu1 %v872_v33 }
 0x2ea   :  { %v740_v18 = vpop.xlane.xlu0 %739 }
 0x2eb   :  { %944 = vrcp.f32 %v740_v18 }
 0x2f1   :  { %v874_v15 = vpop.xlane.xlu1 %873 }
 0x2f2   :  { %946 = vrcp.f32 %v874_v15 }
 0x2f5   :  { %v945_v63 = vpop.eup %944 }
 0x2f6   :  { %v743_v60 = vmul.f32 %v945_v63, %v941_v39 }
 0x2f8   :  { %745 = vst.msk [vmem:[#allocation5] sm:$0x1] %vm744_vm1, %v743_v60 }
 0x2fc   :  { %v947_v43 = vpop.eup %946 }
 0x2fd   :  { %v877_v2 = vmul.f32 %v947_v43, %v943_v8 }
 0x2ff   :  { %878 = vst.msk [vmem:[#allocation5 + $0x1] sm:$0x1] %vm744_vm1, %v877_v2 }
 0x300   :  { %971 = shalt.err (!%p968_p9)
}
 0x301   :  { %s972_s18 = scalar_lea.hbm %s1596_s5, 32 }
 0x302   :  { %p973_p10 = scmp.ne.s32.totalorder %s1596_s5, %s972_s18  ;;  %p976_p11 = scmp.lt.u32.totalorder %s972_s18, %s1596_s5 }
 0x304   :  { %p978_p12 = pnand %p976_p11, %p973_p10 }
 0x306   :  { %981 = shalt.err (!%p978_p12)
}
 0x307   :  { %888 = dma.vmem_to_hbm [thread:$0]  %s886_s14, 32, %s1596_s5, [#allocation3]  }
 0x308   :  { %984 = dma.done.wait [#allocation3], 32  }
 0x309   :  { %985 = vsyncadd [#allocation3], 4294967264 }
 0x30a   :  { %892 = vsyncpa [#allocation3], 1 }
 0x30b   :  { %893 = vsyncpa [#allocation4], 1 }

</bundles_post_ra>
